<compile_context>
chip_gen: v5e
topology: v5e:2x2
jax: 0.10.0
libtpu: 0.0.40
codegen_flags: <defaults>
</compile_context>

<pallas_src>
import functools

import jax
import jax.numpy as jnp
from jax import lax
from jax.experimental import pallas as pl
from jax.experimental.pallas import tpu as pltpu

EPS = 1e-5


def _round_up(x, m):
    return (x + m - 1) // m * m


# ------------- kernel A: per-image conv chain + partial BN statistics ---------
def _conv_stats_kernel(x_ref, mask_ref, w1_ref, b1_ref, w2_ref, b2_ref,
                       y2_ref, stats_ref, l1_ref, *, wp, guard, sv):
    """One low-res image: y2 = relu(conv2(relu(conv1(x)))) + BN partial sums.

    Activations are (C, lanes): the zero-padded image flattened row-major on
    the lane axis with `guard` zero slack on both ends, so every 3x3 tap is a
    constant lane offset and each conv is 9 accumulated MXU dots (no im2col
    patch matrix is materialized).
    """
    mask = mask_ref[...]                                  # (1, sv): valid pixels

    def conv3x3(src_ref, w_ref, b_ref):
        acc = None
        for t in range(9):                                # unrolled, static offsets
            off = guard + (t // 3 - 1) * wp + (t % 3 - 1)
            part = jnp.dot(w_ref[t], src_ref[:, off:off + sv],
                           preferred_element_type=jnp.float32)
            acc = part if acc is None else acc + part
        return acc + b_ref[...]

    # conv_1.conv_low2low + ReLU.  The mask zeroes the pad ring (and lanes past
    # the real image) so l1 provides conv_2's zero padding.
    l1 = jnp.maximum(conv3x3(x_ref, w1_ref, b1_ref), 0.0) * mask
    cl, win = l1_ref.shape
    l1_ref[:, :guard] = jnp.zeros((cl, guard), jnp.float32)           # guard strips
    l1_ref[:, guard + sv:] = jnp.zeros((cl, win - guard - sv), jnp.float32)
    l1_ref[:, guard:guard + sv] = l1

    # fused conv_2.{low2low, low2high} + ReLU  (pre-BatchNorm activations)
    y2 = jnp.maximum(conv3x3(l1_ref, w2_ref, b2_ref), 0.0) * mask
    y2_ref[...] = y2

    # per-image partial BatchNorm statistics over the valid pixels
    stats_ref[:, 0:1] = jnp.sum(y2, axis=1, keepdims=True)
    stats_ref[:, 1:2] = jnp.sum(y2 * y2, axis=1, keepdims=True)


# ------------- kernel B: high-frequency BN + residual (native layout) ---------
def _high_bn_residual_kernel(x_ref, h_ref, sc_ref, sh_ref, o_ref, *, wh):
    """out_high = BN(h2)*weight + x_high.

    x_high is viewed as (B, Ch, Hl, 2*Wh): lane row i packs high-res rows
    [2i | 2i+1], so the nearest-2x row upsample is adding the same (already
    W-upsampled) low-res row to both halves.  BN is a per-channel scale/shift.
    """
    hb = h_ref[...] * sc_ref[...] + sh_ref[...]           # (Ch, rt, Wh)
    o_ref[:, :, :wh] = x_ref[:, :, :wh] + hb              # high-res rows 2i
    o_ref[:, :, wh:] = x_ref[:, :, wh:] + hb              # high-res rows 2i+1


# ------------- kernel C: low-frequency BN + residual (small, flattened) -------
def _low_bn_residual_kernel(x_ref, y_ref, sc_ref, sh_ref, o_ref):
    o_ref[...] = x_ref[...] + y_ref[...] * sc_ref[...] + sh_ref[...]


def _row_tile(nrows, per_row_bytes, budget=8 << 20):
    """Largest row tile keeping the double-buffered working set under `budget`
    that is a multiple of 8 and divides nrows (or the full extent)."""
    cap = max(8, budget // max(per_row_bytes, 1))
    if nrows <= cap:
        return nrows
    t = min(nrows, cap) // 8 * 8
    while t >= 8:
        if nrows % t == 0:
            return t
        t -= 8
    return nrows                       # no aligned divisor under budget: full rows


# ---------------------------------- wrapper -----------------------------------
def octave_residual_layer(x_high_nchw, x_low_nchw, params, *, weight=1.0):
    """Forward of OctaveResidualLayer(channels, alpha=0.5, use_bn=True)."""
    f32 = jnp.float32
    xh = x_high_nchw.astype(f32)
    xl = x_low_nchw.astype(f32)
    B, Ch, Hh, Wh = xh.shape
    _, Cl, Hl, Wl = xl.shape
    assert Hh == 2 * Hl and Wh == 2 * Wl

    Hp, Wp = Hl + 2, Wl + 2            # 3x3 zero-padded low-res image
    S = Hp * Wp                        # flattened padded positions per image
    guard = Wp + 1                     # max |flattened 3x3 tap offset|
    SV = _round_up(S, 128)             # lane-dense compute width
    Win = _round_up(SV + 2 * guard, 128)
    Clp = _round_up(Cl, 8)             # sublane-padded channel counts
    Ctot = Cl + Ch
    Ctotp = _round_up(Ctot, 8)

    # ---- kernel A inputs (all low-resolution, small) -------------------------
    xpad = jnp.pad(xl, ((0, 0), (0, Clp - Cl), (1, 1), (1, 1)))      # (B,Clp,Hp,Wp)
    xg = jnp.pad(xpad.reshape(B, Clp, S),
                 ((0, 0), (0, 0), (guard, Win - S - guard)))         # (B,Clp,Win)
    mask = jnp.pad(
        jnp.pad(jnp.ones((Hl, Wl), f32), ((1, 1), (1, 1))).reshape(1, S),
        ((0, 0), (0, SV - S)))                                       # (1, SV)

    # weights: torch (Cout,Cin,3,3) -> tap-major (9, Cout_pad, Cin_pad)
    # TODO(synk): at realistic channel counts cast these (and xg) to bf16 for the
    # v6e/v7x MXU, keeping f32 accumulation and f32 BN statistics.
    def prep_w(w, cout_p, cin_p):
        co, ci, _, _ = w.shape
        w = jnp.transpose(w.astype(f32), (2, 3, 0, 1)).reshape(9, co, ci)
        return jnp.pad(w, ((0, 0), (0, cout_p - co), (0, cin_p - ci)))

    w1 = prep_w(params["conv1_l2l_w"], Clp, Clp)
    b1 = jnp.pad(params["conv1_l2l_b"].astype(f32), (0, Clp - Cl)).reshape(Clp, 1)
    # conv_2 low2low / low2high fused along Cout (low channels first).
    w2 = jnp.pad(jnp.concatenate([prep_w(params["conv2_l2l_w"], Cl, Clp),
                                  prep_w(params["conv2_l2h_w"], Ch, Clp)], axis=1),
                 ((0, 0), (0, Ctotp - Ctot), (0, 0)))
    b2 = jnp.pad(jnp.concatenate([params["conv2_l2l_b"],
                                  params["conv2_l2h_b"]]).astype(f32),
                 (0, Ctotp - Ctot)).reshape(Ctotp, 1)

    # explicit scoped-VMEM limit from the computed per-step footprint
    fp = 4 * (2 * Clp * Win            # double-buffered input block
              + Clp * Win              # l1 scratch
              + 2 * Ctotp * SV         # double-buffered y2 output block
              + 9 * Clp * Clp + 9 * Ctotp * Clp + 2 * SV + 4 * Ctotp + Clp + Ctotp)
    vmem_limit = int(min(max(2 * fp + (8 << 20), 32 << 20), 64 << 20))

    y2, stats = pl.pallas_call(
        functools.partial(_conv_stats_kernel, wp=Wp, guard=guard, sv=SV),
        out_shape=(jax.ShapeDtypeStruct((B, Ctotp, SV), f32),
                   jax.ShapeDtypeStruct((B, Ctotp, 2), f32)),
        grid=(B,),
        in_specs=[pl.BlockSpec((None, Clp, Win), lambda b: (b, 0, 0)),
                  pl.BlockSpec((1, SV), lambda b: (0, 0)),
                  pl.BlockSpec((9, Clp, Clp), lambda b: (0, 0, 0)),
                  pl.BlockSpec((Clp, 1), lambda b: (0, 0)),
                  pl.BlockSpec((9, Ctotp, Clp), lambda b: (0, 0, 0)),
                  pl.BlockSpec((Ctotp, 1), lambda b: (0, 0))],
        out_specs=(pl.BlockSpec((None, Ctotp, SV), lambda b: (b, 0, 0)),
                   pl.BlockSpec((None, Ctotp, 2), lambda b: (b, 0, 0))),
        scratch_shapes=[pltpu.VMEM((Clp, Win), f32)],
        compiler_params=pltpu.CompilerParams(
            dimension_semantics=("parallel",),
            vmem_limit_bytes=vmem_limit),
    )(xg, mask, w1, b1, w2, b2)

    # ---- finalize BatchNorm (training-mode biased stats): a few scalars ------
    n = float(B * Hl * Wl)
    tot = jnp.sum(stats, axis=0)                          # (Ctotp, 2)
    mean = tot[:, 0] / n
    var = jnp.maximum(tot[:, 1] / n - mean * mean, 0.0)
    inv = lax.rsqrt(var + EPS)
    gamma = jnp.pad(jnp.concatenate([params["bn_l_gamma"],
                                     params["bn_h_gamma"]]).astype(f32),
                    (0, Ctotp - Ctot))
    beta = jnp.pad(jnp.concatenate([params["bn_l_beta"],
                                    params["bn_h_beta"]]).astype(f32),
                   (0, Ctotp - Ctot))
    scale = gamma * inv * weight                          # BN + residual weight
    shift = (beta - gamma * mean * inv) * weight

    # ---- small wrapper glue: valid interior out of the padded low-res layout -
    y2i = y2[:, :, :S].reshape(B, Ctotp, Hp, Wp)[:, :, 1:1 + Hl, 1:1 + Wl]
    y2l = y2i[:, :Cl].reshape(B, Cl, Hl * Wl)             # pre-BN low branch
    h_up = jnp.repeat(y2i[:, Cl:Ctot], 2, axis=3)         # (B,Ch,Hl,Wh) W-upsampled
    sc_h = jnp.broadcast_to(scale[Cl:Ctot].reshape(Ch, 1, 1), (Ch, 1, Wh))
    sh_h = jnp.broadcast_to(shift[Cl:Ctot].reshape(Ch, 1, 1), (Ch, 1, Wh))
    sc_l = scale[:Cl].reshape(Cl, 1)
    sh_l = shift[:Cl].reshape(Cl, 1)

    # ---- kernel B: high-frequency BN + residual in (near-)native NCHW layout -
    # Only a free reshape touches x_high: (B,Ch,2*Hl,Wh) -> (B,Ch,Hl,2*Wh).
    x6 = xh.reshape(B, Ch, Hl, 2 * Wh)
    rt = _row_tile(Hl, per_row_bytes=2 * (2 * Wh + 2 * Wh + Wh) * Ch * 4)
    out6 = pl.pallas_call(
        functools.partial(_high_bn_residual_kernel, wh=Wh),
        out_shape=jax.ShapeDtypeStruct((B, Ch, Hl, 2 * Wh), f32),
        grid=(B, Hl // rt),
        in_specs=[pl.BlockSpec((None, Ch, rt, 2 * Wh), lambda b, i: (b, 0, i, 0)),
                  pl.BlockSpec((None, Ch, rt, Wh), lambda b, i: (b, 0, i, 0)),
                  pl.BlockSpec((Ch, 1, Wh), lambda b, i: (0, 0, 0)),
                  pl.BlockSpec((Ch, 1, Wh), lambda b, i: (0, 0, 0))],
        out_specs=pl.BlockSpec((None, Ch, rt, 2 * Wh), lambda b, i: (b, 0, i, 0)),
        compiler_params=pltpu.CompilerParams(
            dimension_semantics=("parallel", "parallel")),
    )(x6, h_up, sc_h, sh_h)
    out_high = out6.reshape(B, Ch, Hh, Wh)

    # ---- kernel C: low-frequency BN + residual (small, lane-dense flattened) -
    out_low = pl.pallas_call(
        _low_bn_residual_kernel,
        out_shape=jax.ShapeDtypeStruct((B, Cl, Hl * Wl), f32),
        grid=(B,),
        in_specs=[pl.BlockSpec((None, Cl, Hl * Wl), lambda b: (b, 0, 0)),
                  pl.BlockSpec((None, Cl, Hl * Wl), lambda b: (b, 0, 0)),
                  pl.BlockSpec((Cl, 1), lambda b: (0, 0)),
                  pl.BlockSpec((Cl, 1), lambda b: (0, 0))],
        out_specs=pl.BlockSpec((None, Cl, Hl * Wl), lambda b: (b, 0, 0)),
        compiler_params=pltpu.CompilerParams(dimension_semantics=("parallel",)),
    )(xl.reshape(B, Cl, Hl * Wl), y2l, sc_l, sh_l)
    out_low = out_low.reshape(B, Cl, Hl, Wl)

    return out_high, out_low


# ----------------------------- pure-JAX reference -----------------------------
def _reference(x_high_nchw, x_low_nchw, params, weight):
    xh = jnp.transpose(x_high_nchw, (0, 2, 3, 1)).astype(jnp.float32)
    xl = jnp.transpose(x_low_nchw, (0, 2, 3, 1)).astype(jnp.float32)

    def conv(x, w, b):
        y = lax.conv_general_dilated(
            x, jnp.transpose(w, (2, 3, 1, 0)), (1, 1), ((1, 1), (1, 1)),
            dimension_numbers=("NHWC", "HWIO", "NHWC"),
            precision=lax.Precision.HIGHEST)
        return y + b.reshape(1, 1, 1, -1)

    up2 = lambda x: jnp.repeat(jnp.repeat(x, 2, axis=1), 2, axis=2)
    relu = lambda x: jnp.maximum(x, 0.0)

    def bn(x, g, bt):
        m = x.mean(axis=(0, 1, 2), keepdims=True)
        v = ((x - m) ** 2).mean(axis=(0, 1, 2), keepdims=True)
        return (x - m) / jnp.sqrt(v + EPS) * g.reshape(1, 1, 1, -1) + bt.reshape(1, 1, 1, -1)

    # conv_1 (first=False): only x_low reaches the outputs.
    h1 = up2(conv(xl, params["conv1_l2h_w"], params["conv1_l2h_b"]))  # dead branch
    l1 = conv(xl, params["conv1_l2l_w"], params["conv1_l2l_b"])
    h1, l1 = relu(h1), relu(l1)
    del h1
    # conv_2: again only its low-frequency input reaches the outputs.
    h2 = up2(conv(l1, params["conv2_l2h_w"], params["conv2_l2h_b"]))
    l2 = conv(l1, params["conv2_l2l_w"], params["conv2_l2l_b"])
    h2, l2 = relu(h2), relu(l2)
    h2 = bn(h2, params["bn_h_gamma"], params["bn_h_beta"])
    l2 = bn(l2, params["bn_l_gamma"], params["bn_l_beta"])
    out_h = h2 * weight + xh
    out_l = l2 * weight + xl
    return (jnp.transpose(out_h, (0, 3, 1, 2)),
            jnp.transpose(out_l, (0, 3, 1, 2)))


if __name__ == "__main__":
    key = jax.random.PRNGKey(0)
    B, channels, H, W = 2, 4, 16, 16
    Ch = int((1 - 0.5) * channels)      # high-frequency channels = 2
    Cl = channels - Ch                  # low-frequency channels  = 2
    ks = jax.random.split(key, 10)

    # PyTorch layout (NCHW): x = (x_high, x_low); x_low at half resolution.
    x_high = jax.random.normal(ks[0], (B, Ch, H, W), jnp.float32)
    x_low = jax.random.normal(ks[1], (B, Cl, H // 2, W // 2), jnp.float32)

    def winit(k_, co, ci):
        return 0.2 * jax.random.normal(k_, (co, ci, 3, 3), jnp.float32)

    params = {
        "conv1_l2l_w": winit(ks[2], Cl, Cl),
        "conv1_l2l_b": 0.1 * jax.random.normal(ks[3], (Cl,), jnp.float32),
        "conv1_l2h_w": winit(ks[4], Ch, Cl),   # only used by the PyTorch dead branch
        "conv1_l2h_b": 0.1 * jax.random.normal(ks[5], (Ch,), jnp.float32),
        "conv2_l2l_w": winit(ks[6], Cl, Cl),
        "conv2_l2l_b": 0.1 * jax.random.normal(ks[7], (Cl,), jnp.float32),
        "conv2_l2h_w": winit(ks[8], Ch, Cl),
        "conv2_l2h_b": 0.1 * jax.random.normal(ks[9], (Ch,), jnp.float32),
        "bn_h_gamma": jnp.ones((Ch,), jnp.float32),
        "bn_h_beta": jnp.zeros((Ch,), jnp.float32),
        "bn_l_gamma": jnp.ones((Cl,), jnp.float32),
        "bn_l_beta": jnp.zeros((Cl,), jnp.float32),
    }

    fwd = jax.jit(functools.partial(octave_residual_layer, weight=1.0))
    out_h, out_l = fwd(x_high, x_low, params)
    out_h = jax.block_until_ready(out_h)
    out_l = jax.block_until_ready(out_l)

    ref_h, ref_l = _reference(x_high, x_low, params, 1.0)
    assert bool(jnp.allclose(out_h, ref_h, atol=1e-3, rtol=1e-3))
    assert bool(jnp.allclose(out_l, ref_l, atol=1e-3, rtol=1e-3))
    print("KERNEL_OK")
</pallas_src>

<mosaic_0001>
module attributes {stable_mosaic.version = 11 : i64} {
  func.func @_conv_stats_kernel(%arg0: i32, %arg1: memref<1x8x256xf32, #tpu.memory_space<vmem>>, %arg2: memref<1x128xf32, #tpu.memory_space<vmem>>, %arg3: memref<9x8x8xf32, #tpu.memory_space<vmem>>, %arg4: memref<8x1xf32, #tpu.memory_space<vmem>>, %arg5: memref<9x8x8xf32, #tpu.memory_space<vmem>>, %arg6: memref<8x1xf32, #tpu.memory_space<vmem>>, %arg7: memref<1x8x128xf32, #tpu.memory_space<vmem>>, %arg8: memref<1x8x2xf32, #tpu.memory_space<vmem>>, %arg9: memref<8x256xf32, #tpu.memory_space<vmem>>) attributes {dimension_semantics = [#tpu.dimension_semantics<parallel>], iteration_bounds = array<i64: 2>, scalar_prefetch = 0 : i64, scratch_operands = 1 : i64, tpu.core_type = #tpu.core_type<tc>, window_params = [{transform_indices = @transform_0, window_bounds = array<i64: 1, 8, 256>}, {pipeline_mode = #tpu.pipeline_mode<synchronous>, transform_indices = @transform_1, window_bounds = array<i64: 1, 128>}, {pipeline_mode = #tpu.pipeline_mode<synchronous>, transform_indices = @transform_2, window_bounds = array<i64: 9, 8, 8>}, {pipeline_mode = #tpu.pipeline_mode<synchronous>, transform_indices = @transform_3, window_bounds = array<i64: 8, 1>}, {pipeline_mode = #tpu.pipeline_mode<synchronous>, transform_indices = @transform_4, window_bounds = array<i64: 9, 8, 8>}, {pipeline_mode = #tpu.pipeline_mode<synchronous>, transform_indices = @transform_5, window_bounds = array<i64: 8, 1>}, {transform_indices = @transform_6, window_bounds = array<i64: 1, 8, 128>}, {transform_indices = @transform_7, window_bounds = array<i64: 1, 8, 2>}]} {
    %c0 = arith.constant 0 : index
    %c0_0 = arith.constant 0 : index
    %0 = vector.load %arg2[%c0, %c0_0] : memref<1x128xf32, #tpu.memory_space<vmem>>, vector<1x128xf32>
    %c0_1 = arith.constant 0 : index
    %c0_2 = arith.constant 0 : index
    %c0_3 = arith.constant 0 : index
    %1 = vector.load %arg3[%c0_1, %c0_2, %c0_3] : memref<9x8x8xf32, #tpu.memory_space<vmem>>, vector<1x8x8xf32>
    %2 = vector.shape_cast %1 : vector<1x8x8xf32> to vector<8x8xf32>
    %c0_4 = arith.constant 0 : index
    %c0_5 = arith.constant 0 : index
    %c0_6 = arith.constant 0 : index
    %3 = vector.load %arg1[%c0_4, %c0_5, %c0_6] : memref<1x8x256xf32, #tpu.memory_space<vmem>>, vector<1x8x128xf32>
    %4 = vector.shape_cast %3 : vector<1x8x128xf32> to vector<8x128xf32>
    %cst = arith.constant dense<0.000000e+00> : vector<8x128xf32>
    %5 = tpu.matmul %2, %4, %cst {dimension_numbers = #tpu.dot_dimension_numbers<[1], [0], [0], [1], [0, 0, 1, 1], [], []>} : vector<8x8xf32>, vector<8x128xf32>, vector<8x128xf32> -> vector<8x128xf32>
    %c1 = arith.constant 1 : index
    %c0_7 = arith.constant 0 : index
    %c0_8 = arith.constant 0 : index
    %6 = vector.load %arg3[%c1, %c0_7, %c0_8] : memref<9x8x8xf32, #tpu.memory_space<vmem>>, vector<1x8x8xf32>
    %7 = vector.shape_cast %6 : vector<1x8x8xf32> to vector<8x8xf32>
    %c0_9 = arith.constant 0 : index
    %c0_10 = arith.constant 0 : index
    %c1_11 = arith.constant 1 : index
    %8 = vector.load %arg1[%c0_9, %c0_10, %c1_11] : memref<1x8x256xf32, #tpu.memory_space<vmem>>, vector<1x8x128xf32>
    %9 = vector.shape_cast %8 : vector<1x8x128xf32> to vector<8x128xf32>
    %cst_12 = arith.constant dense<0.000000e+00> : vector<8x128xf32>
    %10 = tpu.matmul %7, %9, %cst_12 {dimension_numbers = #tpu.dot_dimension_numbers<[1], [0], [0], [1], [0, 0, 1, 1], [], []>} : vector<8x8xf32>, vector<8x128xf32>, vector<8x128xf32> -> vector<8x128xf32>
    %11 = arith.addf %5, %10 : vector<8x128xf32>
    %c2 = arith.constant 2 : index
    %c0_13 = arith.constant 0 : index
    %c0_14 = arith.constant 0 : index
    %12 = vector.load %arg3[%c2, %c0_13, %c0_14] : memref<9x8x8xf32, #tpu.memory_space<vmem>>, vector<1x8x8xf32>
    %13 = vector.shape_cast %12 : vector<1x8x8xf32> to vector<8x8xf32>
    %c0_15 = arith.constant 0 : index
    %c0_16 = arith.constant 0 : index
    %c2_17 = arith.constant 2 : index
    %14 = vector.load %arg1[%c0_15, %c0_16, %c2_17] : memref<1x8x256xf32, #tpu.memory_space<vmem>>, vector<1x8x128xf32>
    %15 = vector.shape_cast %14 : vector<1x8x128xf32> to vector<8x128xf32>
    %cst_18 = arith.constant dense<0.000000e+00> : vector<8x128xf32>
    %16 = tpu.matmul %13, %15, %cst_18 {dimension_numbers = #tpu.dot_dimension_numbers<[1], [0], [0], [1], [0, 0, 1, 1], [], []>} : vector<8x8xf32>, vector<8x128xf32>, vector<8x128xf32> -> vector<8x128xf32>
    %17 = arith.addf %11, %16 : vector<8x128xf32>
    %c3 = arith.constant 3 : index
    %c0_19 = arith.constant 0 : index
    %c0_20 = arith.constant 0 : index
    %18 = vector.load %arg3[%c3, %c0_19, %c0_20] : memref<9x8x8xf32, #tpu.memory_space<vmem>>, vector<1x8x8xf32>
    %19 = vector.shape_cast %18 : vector<1x8x8xf32> to vector<8x8xf32>
    %c0_21 = arith.constant 0 : index
    %c0_22 = arith.constant 0 : index
    %c10 = arith.constant 10 : index
    %20 = vector.load %arg1[%c0_21, %c0_22, %c10] : memref<1x8x256xf32, #tpu.memory_space<vmem>>, vector<1x8x128xf32>
    %21 = vector.shape_cast %20 : vector<1x8x128xf32> to vector<8x128xf32>
    %cst_23 = arith.constant dense<0.000000e+00> : vector<8x128xf32>
    %22 = tpu.matmul %19, %21, %cst_23 {dimension_numbers = #tpu.dot_dimension_numbers<[1], [0], [0], [1], [0, 0, 1, 1], [], []>} : vector<8x8xf32>, vector<8x128xf32>, vector<8x128xf32> -> vector<8x128xf32>
    %23 = arith.addf %17, %22 : vector<8x128xf32>
    %c4 = arith.constant 4 : index
    %c0_24 = arith.constant 0 : index
    %c0_25 = arith.constant 0 : index
    %24 = vector.load %arg3[%c4, %c0_24, %c0_25] : memref<9x8x8xf32, #tpu.memory_space<vmem>>, vector<1x8x8xf32>
    %25 = vector.shape_cast %24 : vector<1x8x8xf32> to vector<8x8xf32>
    %c0_26 = arith.constant 0 : index
    %c0_27 = arith.constant 0 : index
    %c11 = arith.constant 11 : index
    %26 = vector.load %arg1[%c0_26, %c0_27, %c11] : memref<1x8x256xf32, #tpu.memory_space<vmem>>, vector<1x8x128xf32>
    %27 = vector.shape_cast %26 : vector<1x8x128xf32> to vector<8x128xf32>
    %cst_28 = arith.constant dense<0.000000e+00> : vector<8x128xf32>
    %28 = tpu.matmul %25, %27, %cst_28 {dimension_numbers = #tpu.dot_dimension_numbers<[1], [0], [0], [1], [0, 0, 1, 1], [], []>} : vector<8x8xf32>, vector<8x128xf32>, vector<8x128xf32> -> vector<8x128xf32>
    %29 = arith.addf %23, %28 : vector<8x128xf32>
    %c5 = arith.constant 5 : index
    %c0_29 = arith.constant 0 : index
    %c0_30 = arith.constant 0 : index
    %30 = vector.load %arg3[%c5, %c0_29, %c0_30] : memref<9x8x8xf32, #tpu.memory_space<vmem>>, vector<1x8x8xf32>
    %31 = vector.shape_cast %30 : vector<1x8x8xf32> to vector<8x8xf32>
    %c0_31 = arith.constant 0 : index
    %c0_32 = arith.constant 0 : index
    %c12 = arith.constant 12 : index
    %32 = vector.load %arg1[%c0_31, %c0_32, %c12] : memref<1x8x256xf32, #tpu.memory_space<vmem>>, vector<1x8x128xf32>
    %33 = vector.shape_cast %32 : vector<1x8x128xf32> to vector<8x128xf32>
    %cst_33 = arith.constant dense<0.000000e+00> : vector<8x128xf32>
    %34 = tpu.matmul %31, %33, %cst_33 {dimension_numbers = #tpu.dot_dimension_numbers<[1], [0], [0], [1], [0, 0, 1, 1], [], []>} : vector<8x8xf32>, vector<8x128xf32>, vector<8x128xf32> -> vector<8x128xf32>
    %35 = arith.addf %29, %34 : vector<8x128xf32>
    %c6 = arith.constant 6 : index
    %c0_34 = arith.constant 0 : index
    %c0_35 = arith.constant 0 : index
    %36 = vector.load %arg3[%c6, %c0_34, %c0_35] : memref<9x8x8xf32, #tpu.memory_space<vmem>>, vector<1x8x8xf32>
    %37 = vector.shape_cast %36 : vector<1x8x8xf32> to vector<8x8xf32>
    %c0_36 = arith.constant 0 : index
    %c0_37 = arith.constant 0 : index
    %c20 = arith.constant 20 : index
    %38 = vector.load %arg1[%c0_36, %c0_37, %c20] : memref<1x8x256xf32, #tpu.memory_space<vmem>>, vector<1x8x128xf32>
    %39 = vector.shape_cast %38 : vector<1x8x128xf32> to vector<8x128xf32>
    %cst_38 = arith.constant dense<0.000000e+00> : vector<8x128xf32>
    %40 = tpu.matmul %37, %39, %cst_38 {dimension_numbers = #tpu.dot_dimension_numbers<[1], [0], [0], [1], [0, 0, 1, 1], [], []>} : vector<8x8xf32>, vector<8x128xf32>, vector<8x128xf32> -> vector<8x128xf32>
    %41 = arith.addf %35, %40 : vector<8x128xf32>
    %c7 = arith.constant 7 : index
    %c0_39 = arith.constant 0 : index
    %c0_40 = arith.constant 0 : index
    %42 = vector.load %arg3[%c7, %c0_39, %c0_40] : memref<9x8x8xf32, #tpu.memory_space<vmem>>, vector<1x8x8xf32>
    %43 = vector.shape_cast %42 : vector<1x8x8xf32> to vector<8x8xf32>
    %c0_41 = arith.constant 0 : index
    %c0_42 = arith.constant 0 : index
    %c21 = arith.constant 21 : index
    %44 = vector.load %arg1[%c0_41, %c0_42, %c21] : memref<1x8x256xf32, #tpu.memory_space<vmem>>, vector<1x8x128xf32>
    %45 = vector.shape_cast %44 : vector<1x8x128xf32> to vector<8x128xf32>
    %cst_43 = arith.constant dense<0.000000e+00> : vector<8x128xf32>
    %46 = tpu.matmul %43, %45, %cst_43 {dimension_numbers = #tpu.dot_dimension_numbers<[1], [0], [0], [1], [0, 0, 1, 1], [], []>} : vector<8x8xf32>, vector<8x128xf32>, vector<8x128xf32> -> vector<8x128xf32>
    %47 = arith.addf %41, %46 : vector<8x128xf32>
    %c8 = arith.constant 8 : index
    %c0_44 = arith.constant 0 : index
    %c0_45 = arith.constant 0 : index
    %48 = vector.load %arg3[%c8, %c0_44, %c0_45] : memref<9x8x8xf32, #tpu.memory_space<vmem>>, vector<1x8x8xf32>
    %49 = vector.shape_cast %48 : vector<1x8x8xf32> to vector<8x8xf32>
    %c0_46 = arith.constant 0 : index
    %c0_47 = arith.constant 0 : index
    %c22 = arith.constant 22 : index
    %50 = vector.load %arg1[%c0_46, %c0_47, %c22] : memref<1x8x256xf32, #tpu.memory_space<vmem>>, vector<1x8x128xf32>
    %51 = vector.shape_cast %50 : vector<1x8x128xf32> to vector<8x128xf32>
    %cst_48 = arith.constant dense<0.000000e+00> : vector<8x128xf32>
    %52 = tpu.matmul %49, %51, %cst_48 {dimension_numbers = #tpu.dot_dimension_numbers<[1], [0], [0], [1], [0, 0, 1, 1], [], []>} : vector<8x8xf32>, vector<8x128xf32>, vector<8x128xf32> -> vector<8x128xf32>
    %53 = arith.addf %47, %52 : vector<8x128xf32>
    %c0_49 = arith.constant 0 : index
    %c0_50 = arith.constant 0 : index
    %54 = vector.load %arg4[%c0_49, %c0_50] : memref<8x1xf32, #tpu.memory_space<vmem>>, vector<8x1xf32>
    %55 = vector.broadcast %54 : vector<8x1xf32> to vector<8x128xf32>
    %56 = arith.addf %53, %55 : vector<8x128xf32>
    %cst_51 = arith.constant 0.000000e+00 : f32
    %57 = vector.broadcast %cst_51 : f32 to vector<8x128xf32>
    %58 = arith.maximumf %56, %57 : vector<8x128xf32>
    %59 = vector.broadcast %0 : vector<1x128xf32> to vector<8x128xf32>
    %60 = arith.mulf %58, %59 : vector<8x128xf32>
    %cst_52 = arith.constant 0.000000e+00 : f32
    %61 = vector.broadcast %cst_52 : f32 to vector<8x11xf32>
    %c0_53 = arith.constant 0 : index
    %c0_54 = arith.constant 0 : index
    %62 = vector.load %arg9[%c0_53, %c0_54] : memref<8x256xf32, #tpu.memory_space<vmem>>, vector<8x11xf32>
    tpu.vector_store %arg9[%c0_53, %c0_54], %61 {strides = array<i32>} : memref<8x256xf32, #tpu.memory_space<vmem>>, vector<8x11xf32>,
    %cst_55 = arith.constant 0.000000e+00 : f32
    %63 = vector.broadcast %cst_55 : f32 to vector<8x117xf32>
    %c0_56 = arith.constant 0 : index
    %c139 = arith.constant 139 : index
    %64 = vector.load %arg9[%c0_56, %c139] : memref<8x256xf32, #tpu.memory_space<vmem>>, vector<8x117xf32>
    tpu.vector_store %arg9[%c0_56, %c139], %63 {strides = array<i32>} : memref<8x256xf32, #tpu.memory_space<vmem>>, vector<8x117xf32>,
    %c0_57 = arith.constant 0 : index
    %c11_58 = arith.constant 11 : index
    %65 = vector.load %arg9[%c0_57, %c11_58] : memref<8x256xf32, #tpu.memory_space<vmem>>, vector<8x128xf32>
    tpu.vector_store %arg9[%c0_57, %c11_58], %60 {strides = array<i32>} : memref<8x256xf32, #tpu.memory_space<vmem>>, vector<8x128xf32>,
    %c0_59 = arith.constant 0 : index
    %c0_60 = arith.constant 0 : index
    %c0_61 = arith.constant 0 : index
    %66 = vector.load %arg5[%c0_59, %c0_60, %c0_61] : memref<9x8x8xf32, #tpu.memory_space<vmem>>, vector<1x8x8xf32>
    %67 = vector.shape_cast %66 : vector<1x8x8xf32> to vector<8x8xf32>
    %c0_62 = arith.constant 0 : index
    %c0_63 = arith.constant 0 : index
    %68 = vector.load %arg9[%c0_62, %c0_63] : memref<8x256xf32, #tpu.memory_space<vmem>>, vector<8x128xf32>
    %cst_64 = arith.constant dense<0.000000e+00> : vector<8x128xf32>
    %69 = tpu.matmul %67, %68, %cst_64 {dimension_numbers = #tpu.dot_dimension_numbers<[1], [0], [0], [1], [0, 0, 1, 1], [], []>} : vector<8x8xf32>, vector<8x128xf32>, vector<8x128xf32> -> vector<8x128xf32>
    %c1_65 = arith.constant 1 : index
    %c0_66 = arith.constant 0 : index
    %c0_67 = arith.constant 0 : index
    %70 = vector.load %arg5[%c1_65, %c0_66, %c0_67] : memref<9x8x8xf32, #tpu.memory_space<vmem>>, vector<1x8x8xf32>
    %71 = vector.shape_cast %70 : vector<1x8x8xf32> to vector<8x8xf32>
    %c0_68 = arith.constant 0 : index
    %c1_69 = arith.constant 1 : index
    %72 = vector.load %arg9[%c0_68, %c1_69] : memref<8x256xf32, #tpu.memory_space<vmem>>, vector<8x128xf32>
    %cst_70 = arith.constant dense<0.000000e+00> : vector<8x128xf32>
    %73 = tpu.matmul %71, %72, %cst_70 {dimension_numbers = #tpu.dot_dimension_numbers<[1], [0], [0], [1], [0, 0, 1, 1], [], []>} : vector<8x8xf32>, vector<8x128xf32>, vector<8x128xf32> -> vector<8x128xf32>
    %74 = arith.addf %69, %73 : vector<8x128xf32>
    %c2_71 = arith.constant 2 : index
    %c0_72 = arith.constant 0 : index
    %c0_73 = arith.constant 0 : index
    %75 = vector.load %arg5[%c2_71, %c0_72, %c0_73] : memref<9x8x8xf32, #tpu.memory_space<vmem>>, vector<1x8x8xf32>
    %76 = vector.shape_cast %75 : vector<1x8x8xf32> to vector<8x8xf32>
    %c0_74 = arith.constant 0 : index
    %c2_75 = arith.constant 2 : index
    %77 = vector.load %arg9[%c0_74, %c2_75] : memref<8x256xf32, #tpu.memory_space<vmem>>, vector<8x128xf32>
    %cst_76 = arith.constant dense<0.000000e+00> : vector<8x128xf32>
    %78 = tpu.matmul %76, %77, %cst_76 {dimension_numbers = #tpu.dot_dimension_numbers<[1], [0], [0], [1], [0, 0, 1, 1], [], []>} : vector<8x8xf32>, vector<8x128xf32>, vector<8x128xf32> -> vector<8x128xf32>
    %79 = arith.addf %74, %78 : vector<8x128xf32>
    %c3_77 = arith.constant 3 : index
    %c0_78 = arith.constant 0 : index
    %c0_79 = arith.constant 0 : index
    %80 = vector.load %arg5[%c3_77, %c0_78, %c0_79] : memref<9x8x8xf32, #tpu.memory_space<vmem>>, vector<1x8x8xf32>
    %81 = vector.shape_cast %80 : vector<1x8x8xf32> to vector<8x8xf32>
    %c0_80 = arith.constant 0 : index
    %c10_81 = arith.constant 10 : index
    %82 = vector.load %arg9[%c0_80, %c10_81] : memref<8x256xf32, #tpu.memory_space<vmem>>, vector<8x128xf32>
    %cst_82 = arith.constant dense<0.000000e+00> : vector<8x128xf32>
    %83 = tpu.matmul %81, %82, %cst_82 {dimension_numbers = #tpu.dot_dimension_numbers<[1], [0], [0], [1], [0, 0, 1, 1], [], []>} : vector<8x8xf32>, vector<8x128xf32>, vector<8x128xf32> -> vector<8x128xf32>
    %84 = arith.addf %79, %83 : vector<8x128xf32>
    %c4_83 = arith.constant 4 : index
    %c0_84 = arith.constant 0 : index
    %c0_85 = arith.constant 0 : index
    %85 = vector.load %arg5[%c4_83, %c0_84, %c0_85] : memref<9x8x8xf32, #tpu.memory_space<vmem>>, vector<1x8x8xf32>
    %86 = vector.shape_cast %85 : vector<1x8x8xf32> to vector<8x8xf32>
    %c0_86 = arith.constant 0 : index
    %c11_87 = arith.constant 11 : index
    %87 = vector.load %arg9[%c0_86, %c11_87] : memref<8x256xf32, #tpu.memory_space<vmem>>, vector<8x128xf32>
    %cst_88 = arith.constant dense<0.000000e+00> : vector<8x128xf32>
    %88 = tpu.matmul %86, %87, %cst_88 {dimension_numbers = #tpu.dot_dimension_numbers<[1], [0], [0], [1], [0, 0, 1, 1], [], []>} : vector<8x8xf32>, vector<8x128xf32>, vector<8x128xf32> -> vector<8x128xf32>
    %89 = arith.addf %84, %88 : vector<8x128xf32>
    %c5_89 = arith.constant 5 : index
    %c0_90 = arith.constant 0 : index
    %c0_91 = arith.constant 0 : index
    %90 = vector.load %arg5[%c5_89, %c0_90, %c0_91] : memref<9x8x8xf32, #tpu.memory_space<vmem>>, vector<1x8x8xf32>
    %91 = vector.shape_cast %90 : vector<1x8x8xf32> to vector<8x8xf32>
    %c0_92 = arith.constant 0 : index
    %c12_93 = arith.constant 12 : index
    %92 = vector.load %arg9[%c0_92, %c12_93] : memref<8x256xf32, #tpu.memory_space<vmem>>, vector<8x128xf32>
    %cst_94 = arith.constant dense<0.000000e+00> : vector<8x128xf32>
    %93 = tpu.matmul %91, %92, %cst_94 {dimension_numbers = #tpu.dot_dimension_numbers<[1], [0], [0], [1], [0, 0, 1, 1], [], []>} : vector<8x8xf32>, vector<8x128xf32>, vector<8x128xf32> -> vector<8x128xf32>
    %94 = arith.addf %89, %93 : vector<8x128xf32>
    %c6_95 = arith.constant 6 : index
    %c0_96 = arith.constant 0 : index
    %c0_97 = arith.constant 0 : index
    %95 = vector.load %arg5[%c6_95, %c0_96, %c0_97] : memref<9x8x8xf32, #tpu.memory_space<vmem>>, vector<1x8x8xf32>
    %96 = vector.shape_cast %95 : vector<1x8x8xf32> to vector<8x8xf32>
    %c0_98 = arith.constant 0 : index
    %c20_99 = arith.constant 20 : index
    %97 = vector.load %arg9[%c0_98, %c20_99] : memref<8x256xf32, #tpu.memory_space<vmem>>, vector<8x128xf32>
    %cst_100 = arith.constant dense<0.000000e+00> : vector<8x128xf32>
    %98 = tpu.matmul %96, %97, %cst_100 {dimension_numbers = #tpu.dot_dimension_numbers<[1], [0], [0], [1], [0, 0, 1, 1], [], []>} : vector<8x8xf32>, vector<8x128xf32>, vector<8x128xf32> -> vector<8x128xf32>
    %99 = arith.addf %94, %98 : vector<8x128xf32>
    %c7_101 = arith.constant 7 : index
    %c0_102 = arith.constant 0 : index
    %c0_103 = arith.constant 0 : index
    %100 = vector.load %arg5[%c7_101, %c0_102, %c0_103] : memref<9x8x8xf32, #tpu.memory_space<vmem>>, vector<1x8x8xf32>
    %101 = vector.shape_cast %100 : vector<1x8x8xf32> to vector<8x8xf32>
    %c0_104 = arith.constant 0 : index
    %c21_105 = arith.constant 21 : index
    %102 = vector.load %arg9[%c0_104, %c21_105] : memref<8x256xf32, #tpu.memory_space<vmem>>, vector<8x128xf32>
    %cst_106 = arith.constant dense<0.000000e+00> : vector<8x128xf32>
    %103 = tpu.matmul %101, %102, %cst_106 {dimension_numbers = #tpu.dot_dimension_numbers<[1], [0], [0], [1], [0, 0, 1, 1], [], []>} : vector<8x8xf32>, vector<8x128xf32>, vector<8x128xf32> -> vector<8x128xf32>
    %104 = arith.addf %99, %103 : vector<8x128xf32>
    %c8_107 = arith.constant 8 : index
    %c0_108 = arith.constant 0 : index
    %c0_109 = arith.constant 0 : index
    %105 = vector.load %arg5[%c8_107, %c0_108, %c0_109] : memref<9x8x8xf32, #tpu.memory_space<vmem>>, vector<1x8x8xf32>
    %106 = vector.shape_cast %105 : vector<1x8x8xf32> to vector<8x8xf32>
    %c0_110 = arith.constant 0 : index
    %c22_111 = arith.constant 22 : index
    %107 = vector.load %arg9[%c0_110, %c22_111] : memref<8x256xf32, #tpu.memory_space<vmem>>, vector<8x128xf32>
    %cst_112 = arith.constant dense<0.000000e+00> : vector<8x128xf32>
    %108 = tpu.matmul %106, %107, %cst_112 {dimension_numbers = #tpu.dot_dimension_numbers<[1], [0], [0], [1], [0, 0, 1, 1], [], []>} : vector<8x8xf32>, vector<8x128xf32>, vector<8x128xf32> -> vector<8x128xf32>
    %109 = arith.addf %104, %108 : vector<8x128xf32>
    %c0_113 = arith.constant 0 : index
    %c0_114 = arith.constant 0 : index
    %110 = vector.load %arg6[%c0_113, %c0_114] : memref<8x1xf32, #tpu.memory_space<vmem>>, vector<8x1xf32>
    %111 = vector.broadcast %110 : vector<8x1xf32> to vector<8x128xf32>
    %112 = arith.addf %109, %111 : vector<8x128xf32>
    %cst_115 = arith.constant 0.000000e+00 : f32
    %113 = vector.broadcast %cst_115 : f32 to vector<8x128xf32>
    %114 = arith.maximumf %112, %113 : vector<8x128xf32>
    %115 = vector.broadcast %0 : vector<1x128xf32> to vector<8x128xf32>
    %116 = arith.mulf %114, %115 : vector<8x128xf32>
    %c0_116 = arith.constant 0 : index
    %c0_117 = arith.constant 0 : index
    %c0_118 = arith.constant 0 : index
    %117 = vector.load %arg7[%c0_116, %c0_117, %c0_118] : memref<1x8x128xf32, #tpu.memory_space<vmem>>, vector<1x8x128xf32>
    %118 = vector.shape_cast %117 : vector<1x8x128xf32> to vector<8x128xf32>
    %119 = vector.shape_cast %116 : vector<8x128xf32> to vector<1x8x128xf32>
    tpu.vector_store %arg7[%c0_116, %c0_117, %c0_118], %119 {strides = array<i32>} : memref<1x8x128xf32, #tpu.memory_space<vmem>>, vector<1x8x128xf32>,
    %cst_119 = arith.constant dense<0.000000e+00> : vector<8xf32>
    %120 = vector.multi_reduction <add>, %116, %cst_119 [1] : vector<8x128xf32> to vector<8xf32>
    %121 = vector.shape_cast %120 : vector<8xf32> to vector<8x1xf32>
    %c0_120 = arith.constant 0 : index
    %c0_121 = arith.constant 0 : index
    %c0_122 = arith.constant 0 : index
    %122 = vector.load %arg8[%c0_120, %c0_121, %c0_122] : memref<1x8x2xf32, #tpu.memory_space<vmem>>, vector<1x8x1xf32>
    %123 = vector.shape_cast %122 : vector<1x8x1xf32> to vector<8x1xf32>
    %124 = vector.shape_cast %121 : vector<8x1xf32> to vector<1x8x1xf32>
    tpu.vector_store %arg8[%c0_120, %c0_121, %c0_122], %124 {strides = array<i32>} : memref<1x8x2xf32, #tpu.memory_space<vmem>>, vector<1x8x1xf32>,
    %125 = arith.mulf %116, %116 : vector<8x128xf32>
    %cst_123 = arith.constant dense<0.000000e+00> : vector<8xf32>
    %126 = vector.multi_reduction <add>, %125, %cst_123 [1] : vector<8x128xf32> to vector<8xf32>
    %127 = vector.shape_cast %126 : vector<8xf32> to vector<8x1xf32>
    %c0_124 = arith.constant 0 : index
    %c0_125 = arith.constant 0 : index
    %c1_126 = arith.constant 1 : index
    %128 = vector.load %arg8[%c0_124, %c0_125, %c1_126] : memref<1x8x2xf32, #tpu.memory_space<vmem>>, vector<1x8x1xf32>
    %129 = vector.shape_cast %128 : vector<1x8x1xf32> to vector<8x1xf32>
    %130 = vector.shape_cast %127 : vector<8x1xf32> to vector<1x8x1xf32>
    tpu.vector_store %arg8[%c0_124, %c0_125, %c1_126], %130 {strides = array<i32>} : memref<1x8x2xf32, #tpu.memory_space<vmem>>, vector<1x8x1xf32>,
    return
  }
  func.func @transform_0(%arg0: i32) -> (i32, i32, i32) {
    %c0_i32 = arith.constant 0 : i32
    %c0_i32_0 = arith.constant 0 : i32
    %c0_i32_1 = arith.constant 0 : i32
    return %arg0, %c0_i32, %c0_i32_0 : i32, i32, i32
  }
  func.func @transform_1(%arg0: i32) -> (i32, i32) {
    %c0_i32 = arith.constant 0 : i32
    %c0_i32_0 = arith.constant 0 : i32
    %c0_i32_1 = arith.constant 0 : i32
    return %c0_i32, %c0_i32_0 : i32, i32
  }
  func.func @transform_2(%arg0: i32) -> (i32, i32, i32) {
    %c0_i32 = arith.constant 0 : i32
    %c0_i32_0 = arith.constant 0 : i32
    %c0_i32_1 = arith.constant 0 : i32
    %c0_i32_2 = arith.constant 0 : i32
    return %c0_i32, %c0_i32_0, %c0_i32_1 : i32, i32, i32
  }
  func.func @transform_3(%arg0: i32) -> (i32, i32) {
    %c0_i32 = arith.constant 0 : i32
    %c0_i32_0 = arith.constant 0 : i32
    %c0_i32_1 = arith.constant 0 : i32
    return %c0_i32, %c0_i32_0 : i32, i32
  }
  func.func @transform_4(%arg0: i32) -> (i32, i32, i32) {
    %c0_i32 = arith.constant 0 : i32
    %c0_i32_0 = arith.constant 0 : i32
    %c0_i32_1 = arith.constant 0 : i32
    %c0_i32_2 = arith.constant 0 : i32
    return %c0_i32, %c0_i32_0, %c0_i32_1 : i32, i32, i32
  }
  func.func @transform_5(%arg0: i32) -> (i32, i32) {
    %c0_i32 = arith.constant 0 : i32
    %c0_i32_0 = arith.constant 0 : i32
    %c0_i32_1 = arith.constant 0 : i32
    return %c0_i32, %c0_i32_0 : i32, i32
  }
  func.func @transform_6(%arg0: i32) -> (i32, i32, i32) {
    %c0_i32 = arith.constant 0 : i32
    %c0_i32_0 = arith.constant 0 : i32
    %c0_i32_1 = arith.constant 0 : i32
    return %arg0, %c0_i32, %c0_i32_0 : i32, i32, i32
  }
  func.func @transform_7(%arg0: i32) -> (i32, i32, i32) {
    %c0_i32 = arith.constant 0 : i32
    %c0_i32_0 = arith.constant 0 : i32
    %c0_i32_1 = arith.constant 0 : i32
    return %arg0, %c0_i32, %c0_i32_0 : i32, i32, i32
  }
}

module attributes {stable_mosaic.version = 11 : i64} {
  func.func @_low_bn_residual_kernel(%arg0: i32, %arg1: memref<1x2x64xf32, #tpu.memory_space<vmem>>, %arg2: memref<1x2x64xf32, #tpu.memory_space<vmem>>, %arg3: memref<2x1xf32, #tpu.memory_space<vmem>>, %arg4: memref<2x1xf32, #tpu.memory_space<vmem>>, %arg5: memref<1x2x64xf32, #tpu.memory_space<vmem>>) attributes {dimension_semantics = [#tpu.dimension_semantics<parallel>], iteration_bounds = array<i64: 2>, scalar_prefetch = 0 : i64, scratch_operands = 0 : i64, tpu.core_type = #tpu.core_type<tc>, window_params = [{transform_indices = @transform_0, window_bounds = array<i64: 1, 2, 64>}, {transform_indices = @transform_1, window_bounds = array<i64: 1, 2, 64>}, {pipeline_mode = #tpu.pipeline_mode<synchronous>, transform_indices = @transform_2, window_bounds = array<i64: 2, 1>}, {pipeline_mode = #tpu.pipeline_mode<synchronous>, transform_indices = @transform_3, window_bounds = array<i64: 2, 1>}, {transform_indices = @transform_4, window_bounds = array<i64: 1, 2, 64>}]} {
    %c0 = arith.constant 0 : index
    %c0_0 = arith.constant 0 : index
    %c0_1 = arith.constant 0 : index
    %0 = vector.load %arg1[%c0, %c0_0, %c0_1] : memref<1x2x64xf32, #tpu.memory_space<vmem>>, vector<1x2x64xf32>
    %1 = vector.shape_cast %0 : vector<1x2x64xf32> to vector<2x64xf32>
    %c0_2 = arith.constant 0 : index
    %c0_3 = arith.constant 0 : index
    %c0_4 = arith.constant 0 : index
    %2 = vector.load %arg2[%c0_2, %c0_3, %c0_4] : memref<1x2x64xf32, #tpu.memory_space<vmem>>, vector<1x2x64xf32>
    %3 = vector.shape_cast %2 : vector<1x2x64xf32> to vector<2x64xf32>
    %c0_5 = arith.constant 0 : index
    %c0_6 = arith.constant 0 : index
    %4 = vector.load %arg3[%c0_5, %c0_6] : memref<2x1xf32, #tpu.memory_space<vmem>>, vector<2x1xf32>
    %5 = vector.broadcast %4 : vector<2x1xf32> to vector<2x64xf32>
    %6 = arith.mulf %3, %5 : vector<2x64xf32>
    %7 = arith.addf %1, %6 : vector<2x64xf32>
    %c0_7 = arith.constant 0 : index
    %c0_8 = arith.constant 0 : index
    %8 = vector.load %arg4[%c0_7, %c0_8] : memref<2x1xf32, #tpu.memory_space<vmem>>, vector<2x1xf32>
    %9 = vector.broadcast %8 : vector<2x1xf32> to vector<2x64xf32>
    %10 = arith.addf %7, %9 : vector<2x64xf32>
    %c0_9 = arith.constant 0 : index
    %c0_10 = arith.constant 0 : index
    %c0_11 = arith.constant 0 : index
    %11 = vector.load %arg5[%c0_9, %c0_10, %c0_11] : memref<1x2x64xf32, #tpu.memory_space<vmem>>, vector<1x2x64xf32>
    %12 = vector.shape_cast %11 : vector<1x2x64xf32> to vector<2x64xf32>
    %13 = vector.shape_cast %10 : vector<2x64xf32> to vector<1x2x64xf32>
    tpu.vector_store %arg5[%c0_9, %c0_10, %c0_11], %13 {strides = array<i32>} : memref<1x2x64xf32, #tpu.memory_space<vmem>>, vector<1x2x64xf32>,
    return
  }
  func.func @transform_0(%arg0: i32) -> (i32, i32, i32) {
    %c0_i32 = arith.constant 0 : i32
    %c0_i32_0 = arith.constant 0 : i32
    %c0_i32_1 = arith.constant 0 : i32
    return %arg0, %c0_i32, %c0_i32_0 : i32, i32, i32
  }
  func.func @transform_1(%arg0: i32) -> (i32, i32, i32) {
    %c0_i32 = arith.constant 0 : i32
    %c0_i32_0 = arith.constant 0 : i32
    %c0_i32_1 = arith.constant 0 : i32
    return %arg0, %c0_i32, %c0_i32_0 : i32, i32, i32
  }
  func.func @transform_2(%arg0: i32) -> (i32, i32) {
    %c0_i32 = arith.constant 0 : i32
    %c0_i32_0 = arith.constant 0 : i32
    %c0_i32_1 = arith.constant 0 : i32
    return %c0_i32, %c0_i32_0 : i32, i32
  }
  func.func @transform_3(%arg0: i32) -> (i32, i32) {
    %c0_i32 = arith.constant 0 : i32
    %c0_i32_0 = arith.constant 0 : i32
    %c0_i32_1 = arith.constant 0 : i32
    return %c0_i32, %c0_i32_0 : i32, i32
  }
  func.func @transform_4(%arg0: i32) -> (i32, i32, i32) {
    %c0_i32 = arith.constant 0 : i32
    %c0_i32_0 = arith.constant 0 : i32
    %c0_i32_1 = arith.constant 0 : i32
    return %arg0, %c0_i32, %c0_i32_0 : i32, i32, i32
  }
}

module attributes {stable_mosaic.version = 11 : i64} {
  func.func @_high_bn_residual_kernel(%arg0: i32, %arg1: i32, %arg2: memref<1x2x8x32xf32, #tpu.memory_space<vmem>>, %arg3: memref<1x2x8x16xf32, #tpu.memory_space<vmem>>, %arg4: memref<2x1x16xf32, #tpu.memory_space<vmem>>, %arg5: memref<2x1x16xf32, #tpu.memory_space<vmem>>, %arg6: memref<1x2x8x32xf32, #tpu.memory_space<vmem>>) attributes {dimension_semantics = [#tpu.dimension_semantics<parallel>, #tpu.dimension_semantics<parallel>], iteration_bounds = array<i64: 2, 1>, scalar_prefetch = 0 : i64, scratch_operands = 0 : i64, tpu.core_type = #tpu.core_type<tc>, window_params = [{transform_indices = @transform_0, window_bounds = array<i64: 1, 2, 8, 32>}, {transform_indices = @transform_1, window_bounds = array<i64: 1, 2, 8, 16>}, {pipeline_mode = #tpu.pipeline_mode<synchronous>, transform_indices = @transform_2, window_bounds = array<i64: 2, 1, 16>}, {pipeline_mode = #tpu.pipeline_mode<synchronous>, transform_indices = @transform_3, window_bounds = array<i64: 2, 1, 16>}, {transform_indices = @transform_4, window_bounds = array<i64: 1, 2, 8, 32>}]} {
    %c0 = arith.constant 0 : index
    %c0_0 = arith.constant 0 : index
    %c0_1 = arith.constant 0 : index
    %c0_2 = arith.constant 0 : index
    %0 = vector.load %arg3[%c0, %c0_0, %c0_1, %c0_2] : memref<1x2x8x16xf32, #tpu.memory_space<vmem>>, vector<1x2x8x16xf32>
    %1 = vector.shape_cast %0 : vector<1x2x8x16xf32> to vector<2x8x16xf32>
    %c0_3 = arith.constant 0 : index
    %c0_4 = arith.constant 0 : index
    %c0_5 = arith.constant 0 : index
    %2 = vector.load %arg4[%c0_3, %c0_4, %c0_5] : memref<2x1x16xf32, #tpu.memory_space<vmem>>, vector<2x1x16xf32>
    %3 = vector.broadcast %2 : vector<2x1x16xf32> to vector<2x8x16xf32>
    %4 = arith.mulf %1, %3 : vector<2x8x16xf32>
    %c0_6 = arith.constant 0 : index
    %c0_7 = arith.constant 0 : index
    %c0_8 = arith.constant 0 : index
    %5 = vector.load %arg5[%c0_6, %c0_7, %c0_8] : memref<2x1x16xf32, #tpu.memory_space<vmem>>, vector<2x1x16xf32>
    %6 = vector.broadcast %5 : vector<2x1x16xf32> to vector<2x8x16xf32>
    %7 = arith.addf %4, %6 : vector<2x8x16xf32>
    %c0_9 = arith.constant 0 : index
    %c0_10 = arith.constant 0 : index
    %c0_11 = arith.constant 0 : index
    %c0_12 = arith.constant 0 : index
    %8 = vector.load %arg2[%c0_9, %c0_10, %c0_11, %c0_12] : memref<1x2x8x32xf32, #tpu.memory_space<vmem>>, vector<1x2x8x16xf32>
    %9 = vector.shape_cast %8 : vector<1x2x8x16xf32> to vector<2x8x16xf32>
    %10 = arith.addf %9, %7 : vector<2x8x16xf32>
    %c0_13 = arith.constant 0 : index
    %c0_14 = arith.constant 0 : index
    %c0_15 = arith.constant 0 : index
    %c0_16 = arith.constant 0 : index
    %11 = vector.load %arg6[%c0_13, %c0_14, %c0_15, %c0_16] : memref<1x2x8x32xf32, #tpu.memory_space<vmem>>, vector<1x2x8x16xf32>
    %12 = vector.shape_cast %11 : vector<1x2x8x16xf32> to vector<2x8x16xf32>
    %13 = vector.shape_cast %10 : vector<2x8x16xf32> to vector<1x2x8x16xf32>
    tpu.vector_store %arg6[%c0_13, %c0_14, %c0_15, %c0_16], %13 {strides = array<i32>} : memref<1x2x8x32xf32, #tpu.memory_space<vmem>>, vector<1x2x8x16xf32>,
    %c0_17 = arith.constant 0 : index
    %c0_18 = arith.constant 0 : index
    %c0_19 = arith.constant 0 : index
    %c16 = arith.constant 16 : index
    %14 = vector.load %arg2[%c0_17, %c0_18, %c0_19, %c16] : memref<1x2x8x32xf32, #tpu.memory_space<vmem>>, vector<1x2x8x16xf32>
    %15 = vector.shape_cast %14 : vector<1x2x8x16xf32> to vector<2x8x16xf32>
    %16 = arith.addf %15, %7 : vector<2x8x16xf32>
    %c0_20 = arith.constant 0 : index
    %c0_21 = arith.constant 0 : index
    %c0_22 = arith.constant 0 : index
    %c16_23 = arith.constant 16 : index
    %17 = vector.load %arg6[%c0_20, %c0_21, %c0_22, %c16_23] : memref<1x2x8x32xf32, #tpu.memory_space<vmem>>, vector<1x2x8x16xf32>
    %18 = vector.shape_cast %17 : vector<1x2x8x16xf32> to vector<2x8x16xf32>
    %19 = vector.shape_cast %16 : vector<2x8x16xf32> to vector<1x2x8x16xf32>
    tpu.vector_store %arg6[%c0_20, %c0_21, %c0_22, %c16_23], %19 {strides = array<i32>} : memref<1x2x8x32xf32, #tpu.memory_space<vmem>>, vector<1x2x8x16xf32>,
    return
  }
  func.func @transform_0(%arg0: i32, %arg1: i32) -> (i32, i32, i32, i32) {
    %c0_i32 = arith.constant 0 : i32
    %c0_i32_0 = arith.constant 0 : i32
    %c0_i32_1 = arith.constant 0 : i32
    return %arg0, %c0_i32, %arg1, %c0_i32_0 : i32, i32, i32, i32
  }
  func.func @transform_1(%arg0: i32, %arg1: i32) -> (i32, i32, i32, i32) {
    %c0_i32 = arith.constant 0 : i32
    %c0_i32_0 = arith.constant 0 : i32
    %c0_i32_1 = arith.constant 0 : i32
    return %arg0, %c0_i32, %arg1, %c0_i32_0 : i32, i32, i32, i32
  }
  func.func @transform_2(%arg0: i32, %arg1: i32) -> (i32, i32, i32) {
    %c0_i32 = arith.constant 0 : i32
    %c0_i32_0 = arith.constant 0 : i32
    %c0_i32_1 = arith.constant 0 : i32
    %c0_i32_2 = arith.constant 0 : i32
    return %c0_i32, %c0_i32_0, %c0_i32_1 : i32, i32, i32
  }
  func.func @transform_3(%arg0: i32, %arg1: i32) -> (i32, i32, i32) {
    %c0_i32 = arith.constant 0 : i32
    %c0_i32_0 = arith.constant 0 : i32
    %c0_i32_1 = arith.constant 0 : i32
    %c0_i32_2 = arith.constant 0 : i32
    return %c0_i32, %c0_i32_0, %c0_i32_1 : i32, i32, i32
  }
  func.func @transform_4(%arg0: i32, %arg1: i32) -> (i32, i32, i32, i32) {
    %c0_i32 = arith.constant 0 : i32
    %c0_i32_0 = arith.constant 0 : i32
    %c0_i32_1 = arith.constant 0 : i32
    return %arg0, %c0_i32, %arg1, %c0_i32_0 : i32, i32, i32, i32
  }
}

</mosaic_0001>

<bundles_post_ra>
// kernel: octave_residual_layer.4
= control target key start
LH: loop header
LB: loop body
LE: loop exit
PB: predicated region body
PF: predicated region fallthrough
CT: control target
= control target key end

     0   :  { %s500_s15 = smov 0   ;;  %s502_s16 = smov 0   ;;  %s548_s0 = inlined_call_operand.vmem [shape: f32[2,2,8,32], index: 0, kind: input, shape index: {}]   ;;  %s549_s1 = inlined_call_operand.vmem [shape: f32[2,2,8,16], index: 1, kind: input, shape index: {}]   ;;  %s550_s2 = inlined_call_operand.vmem [shape: f32[2,1,16], index: 2, kind: input, shape index: {}]   ;;  %s551_s3 = inlined_call_operand.vmem [shape: f32[2,1,16], index: 3, kind: input, shape index: {}]   ;;  %s552_s4 = inlined_call_operand.vmem [shape: f32[2,2,8,32], index: 4, kind: output, shape index: {}]  }
   0x1   :  { %s504_s17 = smov 0  }
   0x2 LB: > { %s26_s18 = sadd.s32 1, %s468_s16  ;;  %p409_p0 = scmp.ge.s32.totalorder %s472_s17, 1  ;;  %s472_s17 = sphi %s504_s17, %s14_s17   ;;  %s468_s16 = sphi %s502_s16, %s554_s16   ;;  %s464_s15 = sphi %s500_s15, %s553_s15  }
   0x3   : > { %p28_p1 = scmp.ge.s32.totalorder %s26_s18, 2  ;;  %p196_p2 = scmp.lt.s32.totalorder %s472_s17, 3 }
   0x5   : > { %s556_s18 = smov (%p28_p1, %s26_s18), 0  ;;  %p197_p3 = pnand %p409_p0, %p196_p2 }
   0x6   : > { %p236_p4 = scmp.lt.s32.totalorder (!%p197_p3), %s464_s15, 1  ;;  %s474_s11 = smov (!%p197_p3), 16  }
   0x7   : > { %200 = sbr.rel (%p197_p3) target bundleno = 146 (0x92), region = 36 }
   0xc   : > { %s558_s15 = smov (!%p236_p4, %s464_s15), 1  ;;  %v446_v0 = vld [vmem:[%s550_s2] ss:$0 sm:$0xff]  ;;  %v448_v1 = vld [vmem:[%s550_s2 + $0x1] ss:$0 sm:$0xff]  ;;  %vm286_vm0 = vcmask 130048  }
   0xd   : > { %s418_s23 = sshll.u32 %s558_s15, 4  ;;  %v447_v2 = vld [vmem:[%s551_s3] ss:$0 sm:$0xff]  ;;  %v449_v3 = vld [vmem:[%s551_s3 + $0x1] ss:$0 sm:$0xff]  ;;  %vm301_vm1 = vcmask 261248  }
   0xe   : > { %s251_s26 = scalar_lea.vmem %s549_s1, %s418_s23  ;;  %s243_s7 = scalar_lea.vmem %s548_s0, %s418_s23 }
   0xf   : > { %v260_v4 = vld [vmem:[%s251_s26] sm:$0xff]  ;;  %v261_v5 = vld [vmem:[%s251_s26 + $0x8] sm:$0xff]  ;;  %s259_s10 = scalar_lea.vmem %s552_s4, %s418_s23 }
  0x10   : > { %v270_v6 = vmul.f32 %v446_v0, %v260_v4  ;;  %v271_v7 = vmul.f32 %v448_v1, %v261_v5  ;;  %v282_v8 = vld [vmem:[%s243_s7] sm:$0xff]  ;;  %v283_v9 = vld [vmem:[%s243_s7 + $0x8] sm:$0xff] }
  0x12   : > { %v280_v10 = vadd.f32 %v447_v2, %v270_v6  ;;  %v281_v11 = vadd.f32 %v449_v3, %v271_v7 }
  0x14   : > { %293 = vrot.lane.b32.xlu0 %v280_v10, %s474_s11  ;;  %v284_v12 = vadd.f32 %v282_v8, %v280_v10  ;;  %v285_v13 = vadd.f32 %v283_v9, %v281_v11 }
  0x16   : > { %287 = vst.msk [vmem:[%s259_s10] sm:$0xff] %vm286_vm0, %v284_v12 }
  0x17   : > { %288 = vst.msk [vmem:[%s259_s10 + $0x8] sm:$0xff] %vm286_vm0, %v285_v13 }
  0x1c   : > { %295 = vrot.lane.b32.xlu0 %v281_v11, %s474_s11 }
  0x86   : > { %v294_v14 = vpop.permute.xlu0 %293 }
  0x87   : > { %v299_v15 = vadd.f32 %v294_v14, %v282_v8 }
  0x89   : > { %302 = vst.msk [vmem:[%s259_s10] sm:$0xff] %vm301_vm1, %v299_v15 }
  0x8e   : > { %v296_v16 = vpop.permute.xlu0 %295 }
  0x8f   : > { %v300_v17 = vadd.f32 %v296_v16, %v283_v9 }
  0x91   : > { %303 = vst.msk [vmem:[%s259_s10 + $0x8] sm:$0xff] %vm301_vm1, %v300_v17 }
  0x92 PF: > { %s14_s17 = sadd.s32 1, %s472_s17   ;;  %s553_s15 = smov %s468_s16 }
  0x93   : > { %p11_p5 = scmp.ge.s32.totalorder %s14_s17, 4   ;;  %s554_s16 = smov %s556_s18 }
  0x95   :  { %13 = sbr.rel (!%p11_p5) target bundleno = 2 (0x2), region = 69 }

// kernel: octave_residual_layer.5
= control target key start
LH: loop header
LB: loop body
LE: loop exit
PB: predicated region body
PF: predicated region fallthrough
CT: control target
= control target key end

     0   :  { %s348_s15 = smov 0   ;;  %s374_s0 = inlined_call_operand.vmem [shape: f32[2,2,64], index: 0, kind: input, shape index: {}]   ;;  %s375_s1 = inlined_call_operand.vmem [shape: f32[2,2,64], index: 1, kind: input, shape index: {}]   ;;  %s376_s2 = inlined_call_operand.vmem [shape: f32[2,1], index: 2, kind: input, shape index: {}]   ;;  %s377_s3 = inlined_call_operand.vmem [shape: f32[2,1], index: 3, kind: input, shape index: {}]   ;;  %s378_s4 = inlined_call_operand.vmem [shape: f32[2,2,64], index: 4, kind: output, shape index: {}]  }
   0x1 LB: > { %s294_s16 = sadd.s32 4294967295, %s320_s15   ;;  %p298_p0 = scmp.ge.s32.totalorder %s320_s15, 1  ;;  %s320_s15 = sphi %s348_s15, %s14_s15  }
   0x2   : > { %p170_p1 = scmp.lt.s32.totalorder %s320_s15, 3 }
   0x4   : > { %p171_p2 = pnand %p298_p0, %p170_p1 }
   0x5   : > { %p198_p3 = scmp.lt.s32.totalorder (!%p171_p2), %s294_s16, 1 }
   0x6   : > { %174 = sbr.rel (%p171_p2) target bundleno = 139 (0x8b), region = 36 }
   0xb   : > { %v212_v0 = vld [vmem:[%s376_s2] sm:$0x3]  ;;  %v322_v1 = vmov 0   ;;  %s380_s16 = smov (!%p198_p3, %s294_s16), 1  ;;  %vm227_vm0 = vcmask 517120  }
   0xc   : > { %313 = vset.pattern.permute.xlu0 %v322_v1  ;;  %v220_v2 = vld [vmem:[%s377_s3] sm:$0x3]  ;;  %s299_s21 = sshll.u32 %s380_s16, 1 }
   0xd   : > { %215 = vperm.xlu0 %313, %v212_v0   ;;  %s205_s24 = scalar_lea.vmem %s375_s1, %s299_s21  ;;  %s201_s27 = scalar_lea.vmem %s374_s0, %s299_s21 }
   0xe   : > { %v211_v4 = vld [vmem:[%s205_s24] sm:$0x3]  ;;  %s209_s30 = scalar_lea.vmem %s378_s4, %s299_s21 }
   0xf   : > { %v210_v6 = vld [vmem:[%s201_s27] sm:$0x3] }
  0x15   : > { %223 = vperm.xlu0 %313, %v220_v2  }
  0x7f   : > { %v216_v3 = vpop.permute.xlu0 %215 }
  0x80   : > { %v218_v5 = vmul.f32 %v216_v3, %v211_v4 }
  0x82   : > { %v219_v7 = vadd.f32 %v218_v5, %v210_v6 }
  0x87   : > { %v224_v8 = vpop.permute.xlu0 %223 }
  0x88   : > { %v226_v9 = vadd.f32 %v224_v8, %v219_v7 }
  0x8a   : > { %228 = vst.msk [vmem:[%s209_s30] sm:$0x3] %vm227_vm0, %v226_v9 }
  0x8b PF: > { %s14_s15 = sadd.s32 1, %s320_s15  }
  0x8c   : > { %p11_p4 = scmp.ge.s32.totalorder %s14_s15, 4  }
  0x8e   :  { %13 = sbr.rel (!%p11_p4) target bundleno = 1 (0x1), region = 69 }

// kernel: octave_residual_layer.3
= control target key start
LH: loop header
LB: loop body
LE: loop exit
PB: predicated region body
PF: predicated region fallthrough
CT: control target
= control target key end

     0   :  { %s1198_s24 = smov 0   ;;  %s1343_s0 = inlined_call_operand.vmem [shape: f32[2,8,256], index: 0, kind: input, shape index: {}]   ;;  %s1344_s1 = inlined_call_operand.vmem [shape: f32[1,128], index: 1, kind: input, shape index: {}]   ;;  %s1345_s2 = inlined_call_operand.vmem [shape: f32[9,8,8], index: 2, kind: input, shape index: {}]   ;;  %s1346_s3 = inlined_call_operand.vmem [shape: f32[8,1], index: 3, kind: input, shape index: {}]   ;;  %s1347_s4 = inlined_call_operand.vmem [shape: f32[9,8,8], index: 4, kind: input, shape index: {}]   ;;  %s1348_s5 = inlined_call_operand.vmem [shape: f32[8,1], index: 5, kind: input, shape index: {}]   ;;  %s1349_s6 = inlined_call_operand.vmem [shape: f32[2,8,128], index: 6, kind: output, shape index: {0}]   ;;  %s1350_s7 = inlined_call_operand.vmem [shape: f32[2,8,2], index: 7, kind: output, shape index: {1}]  }
   0x1 LB: > { %s991_s25 = sadd.s32 4294967295, %s1145_s24   ;;  %p995_p0 = scmp.ge.s32.totalorder %s1145_s24, 1  ;;  %s1145_s24 = sphi %s1198_s24, %s18_s24  }
   0x2   : > { %p240_p1 = scmp.lt.s32.totalorder %s1145_s24, 3 }
   0x4   : > { %p241_p2 = pnand %p995_p0, %p240_p1 }
   0x5   : > { %p275_p3 = scmp.lt.s32.totalorder (!%p241_p2), %s991_s25, 1  ;;  %s1147_s30 = smov (!%p241_p2), 126  }
   0x6   : > { %244 = sbr.rel (%p241_p2) target bundleno = 812 (0x32c), region = 44  ;;  %s1148_s8 = smov (!%p241_p2), 118  }
   0x7   : > { %s1149_s9 = smov (!%p241_p2), 117   ;;  %s1150_s10 = smov (!%p241_p2), 127  }
   0x8   : > { %s1151_s11 = smov (!%p241_p2), 108   ;;  %s1152_s12 = smov (!%p241_p2), 107  }
   0x9   : > { %s1153_s13 = smov (!%p241_p2), 116   ;;  %s1154_s14 = smov (!%p241_p2), 106  }
   0xb   : > { %s1352_s25 = smov (!%p275_p3, %s991_s25), 1  ;;  %vm304_vm0 = vcmask 64512   ;;  %v289_v3 = vld [vmem:[%s1345_s2] sm:$0xff]  ;;  %v1155_v7 = vmov 0   ;;  %vm357_vm1 = vcmask 1031168   ;;  %vm390_vm2 = vcmask 965632  }
   0xc   : > { %s1036_s26 = sshll.u32 %s1352_s25, 4  ;;  %v582_v6 = vld [vmem:[%s1346_s3] sm:$0xff]  ;;  %1096 = vset.pattern.permute.xlu2 %v1155_v7  ;;  %1137 = vset.pattern.permute.xlu0 %v1155_v7  ;;  %vm522_vm3 = vcmask 875520   ;;  %v1003_v16 = vld [vmem:[%s1345_s2 + $0x10] sm:$0xff]  ;;  %v1005_v17 = vld [vmem:[%s1345_s2 + $0x18] sm:$0xff]  ;;  %vm301_vm4 = vcmask 1039360  }
   0xd   : > { %s279_s29 = scalar_lea.vmem %s1343_s0, %s1036_s26  ;;  %vm423_vm5 = vcmask 957440   ;;  %vm489_vm6 = vcmask 883712   ;;  %v1000_v29 = vld [vmem:[%s1345_s2 + $0x8] sm:$0xff]  ;;  %v1011_v30 = vld [vmem:[%s1345_s2 + $0x30] sm:$0xff]  ;;  %v1013_v34 = vld [vmem:[%s1345_s2 + $0x38] sm:$0xff]  ;;  %vm456_vm7 = vcmask 949248  }
   0xe   : > { %v293_v0 = vld [vmem:[%s279_s29] sm:$0xff]  ;;  %v294_v1 = vld [vmem:[%s279_s29 + $0x8] sm:$0xff]  ;;  %vm555_vm8 = vcmask 867328   ;;  %vm594_vm9 = vcmask 89088   ;;  %vm596_vm10 = vcmask 1047640   ;;  %v1156_v46 = vmov 0.0  }
   0xf   : > { %v1056_v2 = vpack.i.bf16 %v294_v1, %v293_v0  ;;  %346 = vmatpush.msra.mxu1 %v293_v0  ;;  %v1007_v41 = vld [vmem:[%s1345_s2 + $0x20] sm:$0xff]  ;;  %v1009_v42 = vld [vmem:[%s1345_s2 + $0x28] sm:$0xff]  ;;  %595 = vst.msk [vmem:[#allocation2] sm:$0xff] %vm594_vm9, %v1156_v46  ;;  %s1157_s26 = smov 11   ;;  %vm900_vm11 = vcmask 7168   ;;  %vm905_vm12 = vcmask 15368  }
  0x10   : > { %1002 = vmatmul.msk.f32.vlgmr.msra.gmra.mxu1 %vm304_vm0, %v289_v3  ;;  %v1015_v45 = vld [vmem:[%s1345_s2 + $0x40] sm:$0xff]  ;;  %597 = vst.msk [vmem:[#allocation2 + $0x8] sm:$0xff] %vm596_vm10, %v1156_v46 }
  0x11   : > { %1057 = vrot.lane.b32.xlu0 %v1056_v2, %s1147_s30  ;;  %1067 = vrot.lane.b32.xlu1 %v1056_v2, %s1148_s8  ;;  %v1272_v1 = vld [vmem:[%s1344_s1] ss:$0 sm:$0xff] }
  0x12   : > { %1077 = vrot.lane.b32.xlu2 %v1056_v2, %s1149_s9 }
  0x19   : > { %1062 = vrot.lane.b32.xlu0 %v1056_v2, %s1150_s10  ;;  %1072 = vrot.lane.b32.xlu1 %v1056_v2, %s1151_s11 }
  0x1a   : > { %1082 = vrot.lane.b32.xlu2 %v1056_v2, %s1152_s12 }
  0x21   : > { %1087 = vrot.lane.b32.xlu0 %v1056_v2, %s1153_s13  ;;  %1092 = vrot.lane.b32.xlu1 %v1056_v2, %s1154_s14 }
  0x22   : > { %585 = vperm.xlu2 %1096, %v582_v6  }
  0x6c   : > { %v1078_v4 = vpop.permute.xlu2 %1077 }
  0x6d   : > { %v1080_v21 = vunpack.i.h.bf16 %v1078_v4  ;;  %v1079_v22 = vunpack.i.l.bf16 %v1078_v4 }
  0x6f   : > { %v424_v32 = vsel %vm423_vm5, %v1079_v22, %v1080_v21 }
  0x74   : > { %v1083_v5 = vpop.permute.xlu2 %1082 }
  0x75   : > { %v1085_v8 = vunpack.i.h.bf16 %v1083_v5  ;;  %v1084_v9 = vunpack.i.l.bf16 %v1083_v5 }
  0x77   : > { %v523_v20 = vsel %vm522_vm3, %v1084_v9, %v1085_v8  ;;  %v604_v9 = vld [vmem:[%s1347_s4] sm:$0xff] }
  0x7c   : > { %v586_v63 = vpop.permute.xlu2 %585 }
  0x83   : > { %v1058_v10 = vpop.permute.xlu0 %1057  ;;  %v1068_v11 = vpop.permute.xlu1 %1067 }
  0x84   : > { %v1060_v12 = vunpack.i.h.bf16 %v1058_v10  ;;  %v1059_v13 = vunpack.i.l.bf16 %v1058_v10  ;;  %v1070_v14 = vunpack.i.h.bf16 %v1068_v11  ;;  %v1069_v15 = vunpack.i.l.bf16 %v1068_v11 }
  0x86   : > { %v358_v18 = vsel %vm357_vm1, %v1059_v13, %v1060_v12  ;;  %v391_v19 = vsel %vm390_vm2, %v1069_v15, %v1070_v14  ;;  %v1017_v13 = vld [vmem:[%s1347_s4 + $0x8] sm:$0xff]  ;;  %v888_v15 = vld [vmem:[%s1348_s5] sm:$0xff] }
  0x87   : > { %378 = vmatpush.msra.mxu2 %v358_v18  ;;  %411 = vmatpush.msra.mxu3 %v391_v19 }
  0x88   : > { %1004 = vmatmul.msk.f32.vlgmr.msra.gmra.mxu2 %vm304_vm0, %v1003_v16  ;;  %1006 = vmatmul.msk.f32.vlgmr.msra.gmra.mxu3 %vm304_vm0, %v1005_v17 }
  0x89   : > { %543 = vmatpush.msrb.mxu3 %v523_v20 }
  0x8b   : > { %v1063_v23 = vpop.permute.xlu0 %1062  ;;  %v1073_v24 = vpop.permute.xlu1 %1072 }
  0x8c   : > { %v1065_v25 = vunpack.i.h.bf16 %v1063_v23  ;;  %v1064_v26 = vunpack.i.l.bf16 %v1063_v23  ;;  %v1075_v27 = vunpack.i.h.bf16 %v1073_v24  ;;  %v1074_v28 = vunpack.i.l.bf16 %v1073_v24 }
  0x8d   : > { %v348_v47 = vpop.f32.mrf.mxu1 }
  0x8e   : > { %v302_v31 = vsel %vm301_vm4, %v1064_v26, %v1065_v25  ;;  %v490_v33 = vsel %vm489_vm6, %v1074_v28, %v1075_v27  ;;  %v1026_v25 = vld [vmem:[%s1347_s4 + $0x28] sm:$0xff]  ;;  %v1020_v28 = vld [vmem:[%s1347_s4 + $0x10] sm:$0xff] }
  0x8f   : > { %323 = vmatpush.msra.mxu0 %v302_v31  ;;  %510 = vmatpush.msrb.mxu2 %v490_v33 }
  0x90   : > { %1001 = vmatmul.msk.f32.vlgmr.msra.gmra.mxu0 %vm304_vm0, %v1000_v29  ;;  %1012 = vmatmul.msk.f32.vlgmr.msrb.gmra.mxu2 %vm304_vm0, %v1011_v30 }
  0x91   : > { %444 = vmatpush.msrb.mxu0 %v424_v32  ;;  %1014 = vmatmul.msk.f32.vlgmr.msrb.gmra.mxu3 %vm304_vm0, %v1013_v34 }
  0x93   : > { %v1088_v35 = vpop.permute.xlu0 %1087  ;;  %v1093_v36 = vpop.permute.xlu1 %1092 }
  0x94   : > { %v1090_v37 = vunpack.i.h.bf16 %v1088_v35  ;;  %v1089_v38 = vunpack.i.l.bf16 %v1088_v35  ;;  %v1095_v39 = vunpack.i.h.bf16 %v1093_v36  ;;  %v1094_v40 = vunpack.i.l.bf16 %v1093_v36 }
  0x96   : > { %v457_v43 = vsel %vm456_vm7, %v1089_v38, %v1090_v37  ;;  %v556_v44 = vsel %vm555_vm8, %v1094_v40, %v1095_v39  ;;  %v1022_v40 = vld [vmem:[%s1347_s4 + $0x18] sm:$0xff] }
  0x97   : > { %477 = vmatpush.msrb.mxu1 %v457_v43  ;;  %576 = vmatpush.msra.mxu0 %v556_v44  ;;  %v1028_v44 = vld [vmem:[%s1347_s4 + $0x30] sm:$0xff] }
  0x98   : > { %1008 = vmatmul.msk.f32.vlgmr.msrb.gmra.mxu0 %vm304_vm0, %v1007_v41  ;;  %1010 = vmatmul.msk.f32.vlgmr.msrb.gmra.mxu1 %vm304_vm0, %v1009_v42  ;;  %v1024_v41 = vld [vmem:[%s1347_s4 + $0x20] sm:$0xff] }
  0xa0   : > { %1016 = vmatmul.msk.f32.vlgmr.msra.gmra.mxu0 %vm304_vm0, %v1015_v45 }
 0x10b   : > { %v380_v49 = vpop.f32.mrf.mxu2  ;;  %v413_v52 = vpop.f32.mrf.mxu3 }
 0x10d   : > { %v325_v48 = vpop.f32.mrf.mxu0 }
 0x10e   : > { %v349_v50 = vadd.f32 %v348_v47, %v325_v48  ;;  %v1030_v48 = vld [vmem:[%s1347_s4 + $0x38] sm:$0xff] }
 0x110   : > { %v383_v51 = vadd.f32 %v380_v49, %v349_v50  ;;  %v1032_v49 = vld [vmem:[%s1347_s4 + $0x40] sm:$0xff] }
 0x112   : > { %v416_v53 = vadd.f32 %v413_v52, %v383_v51 }
 0x113   : > { %v512_v57 = vpop.f32.mrf.mxu2 }
 0x114   : > { %v545_v59 = vpop.f32.mrf.mxu3 }
 0x115   : > { %v446_v54 = vpop.f32.mrf.mxu0  ;;  %v479_v55 = vpop.f32.mrf.mxu1 }
 0x116   : > { %v449_v56 = vadd.f32 %v446_v54, %v416_v53 }
 0x118   : > { %v482_v58 = vadd.f32 %v479_v55, %v449_v56 }
 0x11a   : > { %v515_v60 = vadd.f32 %v512_v57, %v482_v58 }
 0x11c   : > { %v548_v61 = vadd.f32 %v545_v59, %v515_v60 }
 0x11d   : > { %v578_v62 = vpop.f32.mrf.mxu0 }
 0x11e   : > { %v581_v0 = vadd.f32 %v578_v62, %v548_v61 }
 0x120   : > { %v588_v2 = vadd.f32 %v586_v63, %v581_v0 }
 0x122   : > { %v589_v3 = vmax.f32 %v588_v2, 0.0 }
 0x124   : > { %v593_v4 = vmul.f32 %v1272_v1, %v589_v3 }
 0x126   : > { %599 = vrot.lane.b32.xlu0 %v593_v4, %s1157_s26  ;;  %s998_s26 = sshll.u32 %s1352_s25, 3 }
 0x198   : > { %v600_v5 = vpop.permute.xlu0 %599 }
 0x199   : > { %602 = vst.msk [vmem:[#allocation2] sm:$0xff] %vm596_vm10, %v600_v5 }
 0x19a   : > { %603 = vst.msk [vmem:[#allocation2 + $0x8] sm:$0xff] %vm594_vm9, %v600_v5 }
 0x1a0   : > { %v605_v6 = vld [vmem:[#allocation2] sm:$0xff] }
 0x1a1   : > { %659 = vmatpush.msra.mxu2 %v605_v6  ;;  %v609_v7 = vld [vmem:[#allocation2 + $0x8] sm:$0xff] }
 0x1a2   : > { %v1107_v8 = vpack.i.bf16 %v609_v7, %v605_v6  ;;  %1019 = vmatmul.msk.f32.vlgmr.msra.gmra.mxu2 %vm304_vm0, %v604_v9 }
 0x1a4   : > { %1108 = vrot.lane.b32.xlu0 %v1107_v8, %s1153_s13  ;;  %1103 = vrot.lane.b32.xlu2 %v1107_v8, %s1150_s10 }
 0x1a5   : > { %1098 = vrot.lane.b32.xlu1 %v1107_v8, %s1147_s30  ;;  %s283_s30 = scalar_lea.vmem %s1349_s6, %s998_s26 }
 0x1ac   : > { %1123 = vrot.lane.b32.xlu0 %v1107_v8, %s1149_s9  ;;  %1118 = vrot.lane.b32.xlu2 %v1107_v8, %s1151_s11  ;;  %s287_s9 = scalar_lea.vmem %s1350_s7, %s998_s26 }
 0x1ad   : > { %1113 = vrot.lane.b32.xlu1 %v1107_v8, %s1148_s8 }
 0x1b4   : > { %1133 = vrot.lane.b32.xlu2 %v1107_v8, %s1154_s14  ;;  %891 = vperm.xlu0 %1137, %v888_v15  }
 0x1b5   : > { %1128 = vrot.lane.b32.xlu1 %v1107_v8, %s1152_s12 }
 0x1fe   : > { %v1104_v10 = vpop.permute.xlu2 %1103 }
 0x1ff   : > { %v1106_v11 = vunpack.i.h.bf16 %v1104_v10  ;;  %v1105_v12 = vunpack.i.l.bf16 %v1104_v10 }
 0x201   : > { %v616_v14 = vsel %vm301_vm4, %v1105_v12, %v1106_v11 }
 0x202   : > { %636 = vmatpush.msra.mxu1 %v616_v14 }
 0x203   : > { %1018 = vmatmul.msk.f32.vlgmr.msra.gmra.mxu1 %vm304_vm0, %v1017_v13 }
 0x206   : > { %v1119_v16 = vpop.permute.xlu2 %1118 }
 0x207   : > { %v1121_v18 = vunpack.i.h.bf16 %v1119_v16  ;;  %v1120_v19 = vunpack.i.l.bf16 %v1119_v16 }
 0x209   : > { %v798_v30 = vsel %vm489_vm6, %v1120_v19, %v1121_v18 }
 0x20e   : > { %v1134_v29 = vpop.permute.xlu2 %1133 }
 0x20f   : > { %v1136_v31 = vunpack.i.h.bf16 %v1134_v29  ;;  %v1135_v32 = vunpack.i.l.bf16 %v1134_v29 }
 0x211   : > { %v862_v43 = vsel %vm555_vm8, %v1135_v32, %v1136_v31 }
 0x216   : > { %v1109_v17 = vpop.permute.xlu0 %1108 }
 0x217   : > { %v1111_v20 = vunpack.i.h.bf16 %v1109_v17  ;;  %v1110_v21 = vunpack.i.l.bf16 %v1109_v17  ;;  %v1099_v22 = vpop.permute.xlu1 %1098 }
 0x218   : > { %v1101_v23 = vunpack.i.h.bf16 %v1099_v22  ;;  %v1100_v24 = vunpack.i.l.bf16 %v1099_v22 }
 0x219   : > { %v766_v26 = vsel %vm456_vm7, %v1110_v21, %v1111_v20 }
 0x21a   : > { %v670_v27 = vsel %vm357_vm1, %v1100_v24, %v1101_v23  ;;  %786 = vmatpush.msrb.mxu2 %v766_v26 }
 0x21b   : > { %690 = vmatpush.msra.mxu3 %v670_v27  ;;  %1027 = vmatmul.msk.f32.vlgmr.msrb.gmra.mxu2 %vm304_vm0, %v1026_v25 }
 0x21c   : > { %1021 = vmatmul.msk.f32.vlgmr.msra.gmra.mxu3 %vm304_vm0, %v1020_v28 }
 0x21d   : > { %818 = vmatpush.msrb.mxu3 %v798_v30 }
 0x21e   : > { %v1124_v33 = vpop.permute.xlu0 %1123 }
 0x21f   : > { %v1126_v34 = vunpack.i.h.bf16 %v1124_v33  ;;  %v1125_v35 = vunpack.i.l.bf16 %v1124_v33  ;;  %v1114_v36 = vpop.permute.xlu1 %1113 }
 0x220   : > { %v1116_v37 = vunpack.i.h.bf16 %v1114_v36  ;;  %v1115_v38 = vunpack.i.l.bf16 %v1114_v36 }
 0x221   : > { %v734_v39 = vsel %vm423_vm5, %v1125_v35, %v1126_v34 }
 0x222   : > { %v702_v42 = vsel %vm390_vm2, %v1115_v38, %v1116_v37  ;;  %754 = vmatpush.msrb.mxu1 %v734_v39 }
 0x223   : > { %722 = vmatpush.msrb.mxu0 %v702_v42  ;;  %1025 = vmatmul.msk.f32.vlgmr.msrb.gmra.mxu1 %vm304_vm0, %v1024_v41 }
 0x224   : > { %882 = vmatpush.msra.mxu1 %v862_v43  ;;  %1023 = vmatmul.msk.f32.vlgmr.msrb.gmra.mxu0 %vm304_vm0, %v1022_v40 }
 0x225   : > { %1029 = vmatmul.msk.f32.vlgmr.msrb.gmra.mxu3 %vm304_vm0, %v1028_v44  ;;  %v661_v52 = vpop.f32.mrf.mxu2 }
 0x226   : > { %v892_v4 = vpop.permute.xlu0 %891 }
 0x227   : > { %v1129_v45 = vpop.permute.xlu1 %1128 }
 0x228   : > { %v1131_v46 = vunpack.i.h.bf16 %v1129_v45  ;;  %v1130_v47 = vunpack.i.l.bf16 %v1129_v45 }
 0x22a   : > { %v830_v50 = vsel %vm522_vm3, %v1130_v47, %v1131_v46 }
 0x22b   : > { %850 = vmatpush.msra.mxu0 %v830_v50  ;;  %1033 = vmatmul.msk.f32.vlgmr.msra.gmra.mxu1 %vm304_vm0, %v1032_v49 }
 0x22c   : > { %1031 = vmatmul.msk.f32.vlgmr.msra.gmra.mxu0 %vm304_vm0, %v1030_v48 }
 0x280   : > { %v638_v51 = vpop.f32.mrf.mxu1 }
 0x281   : > { %v662_v53 = vadd.f32 %v661_v52, %v638_v51 }
 0x29e   : > { %v788_v59 = vpop.f32.mrf.mxu2 }
 0x29f   : > { %v692_v54 = vpop.f32.mrf.mxu3 }
 0x2a0   : > { %v695_v55 = vadd.f32 %v692_v54, %v662_v53  ;;  %v756_v57 = vpop.f32.mrf.mxu1 }
 0x2a1   : > { %v724_v56 = vpop.f32.mrf.mxu0 }
 0x2a2   : > { %v727_v58 = vadd.f32 %v724_v56, %v695_v55 }
 0x2a4   : > { %v759_v60 = vadd.f32 %v756_v57, %v727_v58 }
 0x2a6   : > { %v791_v61 = vadd.f32 %v788_v59, %v759_v60 }
 0x2a8   : > { %v820_v62 = vpop.f32.mrf.mxu3  ;;  %v884_v2 = vpop.f32.mrf.mxu1 }
 0x2a9   : > { %v823_v63 = vadd.f32 %v820_v62, %v791_v61  ;;  %v852_v0 = vpop.f32.mrf.mxu0 }
 0x2ab   : > { %v855_v3 = vadd.f32 %v852_v0, %v823_v63 }
 0x2ad   : > { %v887_v5 = vadd.f32 %v884_v2, %v855_v3 }
 0x2af   : > { %v894_v6 = vadd.f32 %v892_v4, %v887_v5 }
 0x2b1   : > { %v895_v7 = vmax.f32 %v894_v6, 0.0 }
 0x2b3   : > { %v896_v8 = vmul.f32 %v1272_v1, %v895_v7 }
 0x2b5   : > { %898 = vadd.xlane.f32.xlu1 %v896_v8  ;;  %v902_v9 = vmul.f32 %v896_v8, %v896_v8  ;;  %897 = vst [vmem:[%s283_s30] sm:$0xff] %v896_v8 }
 0x2b7   : > { %903 = vadd.xlane.f32.xlu2 %v902_v9 }
 0x328   : > { %v899_v10 = vpop.xlane.xlu1 %898 }
 0x329   : > { %901 = vst.msk [vmem:[%s287_s9] sm:$0xff] %vm900_vm11, %v899_v10 }
 0x32a   : > { %v904_v11 = vpop.xlane.xlu2 %903 }
 0x32b   : > { %906 = vst.msk [vmem:[%s287_s9] sm:$0xff] %vm905_vm12, %v904_v11 }
 0x32c PF: > { %s18_s24 = sadd.s32 1, %s1145_s24  }
 0x32d   : > { %p15_p4 = scmp.ge.s32.totalorder %s18_s24, 4  }
 0x32f   :  { %17 = sbr.rel (!%p15_p4) target bundleno = 1 (0x1), region = 102 }

</bundles_post_ra>
